<compile_context>
chip_gen: v7x
topology: tpu7x:2x2x1
jax: 0.10.0
libtpu: 0.0.40
codegen_flags: <defaults>
</compile_context>

<pallas_src>
import functools
import math

import numpy as np

import jax
import jax.numpy as jnp
from jax import lax
from jax.experimental import pallas as pl
from jax.experimental.pallas import tpu as pltpu


_NEG = float(np.finfo(np.float32).min)   # "minus infinity" fill for max-pool edge taps


# ---------------- grid-invariant constants (built once, cached on device) ----------------

@functools.lru_cache(maxsize=None)
def _pool_constants(H, W, stride, mode):
    """Edge-validity masks + (stride/count) constants for a 3x3, pad=1 pool."""
    HW = H * W
    HO = (H - 1) // stride + 1
    WO = (W - 1) // stride + 1
    idx = np.arange(HW)
    hh, ww = idx // W, idx % W
    # rows: [w>0 (left tap valid), w<W-1 (right), h>0 (up), h<H-1 (down)]
    edge = np.stack([ww > 0, ww < W - 1, hh > 0, hh < H - 1]).astype(np.float32)
    consts = {"edge": jax.device_put(edge)}
    if stride == 1:
        if mode == "avg":
            cnt = (1.0 + (hh > 0) + (hh < H - 1)) * (1.0 + (ww > 0) + (ww < W - 1))
            consts["rc"] = jax.device_put((1.0 / cnt).astype(np.float32).reshape(1, HW))
    else:
        # One-hot downsample matrix (exact in f32); for avg the reciprocal valid-tap
        # count of the selected window is folded in, so the kernel never divides.
        sd = np.zeros((HW, HO * WO), np.float32)
        for i in range(HO):
            for j in range(WO):
                h, w = i * stride, j * stride
                if mode == "avg":
                    val = 1.0 / ((1 + (h > 0) + (h < H - 1)) * (1 + (w > 0) + (w < W - 1)))
                else:
                    val = 1.0
                sd[h * W + w, i * WO + j] = val
        consts["sd"] = jax.device_put(sd)
    return consts


# ---------------- block-size selection (fill the MXU M dim, amortize grid overhead) -------

def _pick_block_rows(total, hw):
    """Rows per grid step for the no-preprocess path (each (n, c) plane is independent)."""
    cap = max(1, min(512, (1 << 20) // (4 * hw)))          # ~1 MiB of x per step
    divs = [d for d in range(1, total + 1) if total % d == 0]
    cand = [d for d in divs if d <= cap and (d % 8 == 0 or d == total)]
    if not cand:
        cand = [d for d in divs if d <= cap] or [total]
    good = [d for d in cand if d >= 256]
    return min(good) if good else max(cand)


def _pick_block_images(n, c_in, c_out, hw):
    """Images per grid step for the preprocess path (1x1 conv mixes channels per image)."""
    rows = max(c_in, c_out)
    cap = max(rows, min(512, (1 << 20) // (4 * hw)))
    divs = [d for d in range(1, n + 1) if n % d == 0]
    cand = [d for d in divs if d * rows <= cap and ((d * c_out) % 8 == 0 or d == n)]
    if not cand:
        return n
    good = [d for d in cand if d * c_out >= 256]
    return min(good) if good else max(cand)


# ---------------- fused kernel: ReLU -> 1x1 conv (+BN folded) -> 3x3 pool (+stride) -------

def _pooling_kernel(*refs, mode, stride, has_pre, nb, width, hw):
    """Works on a (rows, H*W) slab with H*W on the lane axis; rows = batched planes."""
    it = iter(refs)
    x_ref = next(it)
    if has_pre:
        w_ref = next(it)
        b_ref = next(it)
    edge_ref = next(it)
    rc_ref = next(it) if (mode == "avg" and stride == 1) else None
    sd_ref = next(it) if stride > 1 else None
    o_ref = next(it)

    # ---- optional preprocess: ReLU -> 1x1 conv with BatchNorm folded into w_eff/b_eff ----
    if has_pre:
        w_eff = w_ref[...]                                  # (C_out, C_in)
        b_eff = b_ref[...]                                  # (C_out, 1)
        pieces = []
        for b in range(nb):                                 # static unroll over images
            xb = jnp.maximum(x_ref[b], 0.0)                 # (C_in, HW)
            pieces.append(jnp.dot(w_eff, xb,
                                  preferred_element_type=jnp.float32) + b_eff)
        y = pieces[0] if nb == 1 else jnp.concatenate(pieces, axis=0)   # (nb*C_out, HW)
    else:
        y = x_ref[...]                                      # (rows, HW)

    # Edge-validity masks (1, HW), broadcast over rows.
    wl = edge_ref[0:1]     # left  tap valid (w > 0)
    wr = edge_ref[1:2]     # right tap valid (w < W-1)
    hu = edge_ref[2:3]     # up    tap valid (h > 0)
    hd = edge_ref[3:4]     # down  tap valid (h < H-1)

    # Separable 3x3 window via lane rotations on the XLU; invalid taps masked with
    # -inf (max) or 0 (avg).  Shifts are taken mod HW so they are always positive.
    if mode == "max":
        neg = jnp.float32(_NEG)
        tl = jnp.where(wl > 0.5, pltpu.roll(y, shift=1, axis=1), neg)
        tr = jnp.where(wr > 0.5, pltpu.roll(y, shift=hw - 1, axis=1), neg)
        m = jnp.maximum(y, jnp.maximum(tl, tr))
        tu = jnp.where(hu > 0.5, pltpu.roll(m, shift=width, axis=1), neg)
        td = jnp.where(hd > 0.5, pltpu.roll(m, shift=hw - width, axis=1), neg)
        m = jnp.maximum(m, jnp.maximum(tu, td))
    else:
        zero = jnp.float32(0.0)
        tl = jnp.where(wl > 0.5, pltpu.roll(y, shift=1, axis=1), zero)
        tr = jnp.where(wr > 0.5, pltpu.roll(y, shift=hw - 1, axis=1), zero)
        m = y + tl + tr
        tu = jnp.where(hu > 0.5, pltpu.roll(m, shift=width, axis=1), zero)
        td = jnp.where(hd > 0.5, pltpu.roll(m, shift=hw - width, axis=1), zero)
        m = m + tu + td
        if stride == 1:
            m = m * rc_ref[...]                             # 1/count (valid taps only)

    if stride > 1:
        # Stride (and, for avg, 1/count) folded into one small exact one-hot matmul.
        m = jnp.dot(m, sd_ref[...], preferred_element_type=jnp.float32)

    o_ref[...] = m.astype(o_ref.dtype)


def pooling_forward(x_nchw, params, stride, mode):
    """Forward pass of the Pooling block.  x is NCHW; result is NCHW."""
    if mode not in ("avg", "max"):
        raise ValueError(f"Invalid mode={mode} in POOLING")
    N, C_in, H, W = x_nchw.shape
    HW = H * W
    HO = (H - 1) // stride + 1
    WO = (W - 1) // stride + 1
    HOWO = HO * WO
    has_pre = params is not None
    C_out = params["w"].shape[0] if has_pre else C_in

    consts = _pool_constants(H, W, stride, mode)

    inputs = []
    in_specs = []

    if has_pre:
        # Conv mixes channels within an image -> batch whole images per grid step.
        nb = _pick_block_images(N, C_in, C_out, HW)
        grid = (N // nb,)
        x3 = x_nchw.reshape(N, C_in, HW).astype(jnp.float32)
        inputs.append(x3)
        in_specs.append(pl.BlockSpec((nb, C_in, HW), lambda g: (g, 0, 0)))
        # Fold BatchNorm (inference, running stats) + optional conv bias into w_eff/b_eff.
        eps = 1e-5
        s = params["gamma"] / jnp.sqrt(params["run_var"] + eps)
        bias = params["bias"] if params["bias"] is not None else jnp.zeros((C_out,), jnp.float32)
        w_eff = (params["w"] * s[:, None]).astype(jnp.float32)
        b_eff = ((bias - params["run_mean"]) * s + params["beta"]).astype(jnp.float32)
        inputs += [w_eff, b_eff.reshape(C_out, 1)]
        in_specs += [pl.BlockSpec((C_out, C_in), lambda g: (0, 0)),
                     pl.BlockSpec((C_out, 1), lambda g: (0, 0))]
        rows_per_step = nb * C_out
        out_rows = N * C_out
    else:
        # No channel mixing: every (n, c) plane is an independent row -> free 2D reshape
        # and any row grouping is valid (fills the M dim and amortizes grid overhead).
        nb = 0
        total_rows = N * C_in
        rows_per_step = _pick_block_rows(total_rows, HW)
        grid = (total_rows // rows_per_step,)
        x2 = x_nchw.reshape(total_rows, HW).astype(jnp.float32)
        inputs.append(x2)
        in_specs.append(pl.BlockSpec((rows_per_step, HW), lambda g: (g, 0)))
        out_rows = total_rows

    inputs.append(consts["edge"])
    in_specs.append(pl.BlockSpec((4, HW), lambda g: (0, 0)))
    if mode == "avg" and stride == 1:
        inputs.append(consts["rc"])
        in_specs.append(pl.BlockSpec((1, HW), lambda g: (0, 0)))
    if stride > 1:
        inputs.append(consts["sd"])
        in_specs.append(pl.BlockSpec((HW, HOWO), lambda g: (0, 0)))

    kernel = functools.partial(_pooling_kernel, mode=mode, stride=stride,
                               has_pre=has_pre, nb=nb, width=W, hw=HW)

    out2 = pl.pallas_call(
        kernel,
        out_shape=jax.ShapeDtypeStruct((out_rows, HOWO), jnp.float32),
        grid_spec=pltpu.PrefetchScalarGridSpec(
            num_scalar_prefetch=0,
            grid=grid,
            in_specs=in_specs,
            out_specs=pl.BlockSpec((rows_per_step, HOWO), lambda g: (g, 0)),
        ),
        compiler_params=pltpu.CompilerParams(
            dimension_semantics=("parallel",),
            vmem_limit_bytes=32 * 1024 * 1024,
        ),
    )(*inputs)

    return out2.reshape(N, C_out, HO, WO)


# ---------------- deterministic param init for the optional ReLUConvBN preprocess ----------

def init_pooling_params(key, C_in, C_out, affine=True):
    if C_in == C_out:
        return None
    k1, k2, k3, k4, k5, k6 = jax.random.split(key, 6)
    bound = 1.0 / math.sqrt(C_in)  # 1x1 kernel: fan_in = C_in
    params = {
        "w": jax.random.uniform(k1, (C_out, C_in), jnp.float32, -bound, bound),
        "gamma": jax.random.uniform(k2, (C_out,), jnp.float32, 0.5, 1.5) if affine
                 else jnp.ones((C_out,), jnp.float32),
        "beta": 0.1 * jax.random.normal(k3, (C_out,), jnp.float32) if affine
                else jnp.zeros((C_out,), jnp.float32),
        "run_mean": 0.1 * jax.random.normal(k4, (C_out,), jnp.float32),
        "run_var": jax.random.uniform(k5, (C_out,), jnp.float32, 0.5, 1.5),
        "bias": None if affine
                else jax.random.uniform(k6, (C_out,), jnp.float32, -bound, bound),
    }
    return params


# ---------------- pure-JAX reference (for self-check) ----------------

def ref_pooling(x_nchw, params, stride, mode, eps=1e-5):
    y = x_nchw.astype(jnp.float32)
    if params is not None:
        xr = jnp.maximum(y, 0.0)
        y = jnp.einsum("nchw,oc->nohw", xr, params["w"])
        if params["bias"] is not None:
            y = y + params["bias"][None, :, None, None]
        inv_std = 1.0 / jnp.sqrt(params["run_var"] + eps)
        scale = params["gamma"] * inv_std
        shift = params["beta"] - params["run_mean"] * scale
        y = y * scale[None, :, None, None] + shift[None, :, None, None]
    pads = ((0, 0), (0, 0), (1, 1), (1, 1))
    if mode == "max":
        return lax.reduce_window(y, -jnp.inf, lax.max, (1, 1, 3, 3),
                                 (1, 1, stride, stride), pads)
    s = lax.reduce_window(y, 0.0, lax.add, (1, 1, 3, 3), (1, 1, stride, stride), pads)
    c = lax.reduce_window(jnp.ones_like(y), 0.0, lax.add, (1, 1, 3, 3),
                          (1, 1, stride, stride), pads)
    return s / c


if __name__ == "__main__":
    key = jax.random.PRNGKey(0)
    kx, kp = jax.random.split(key)

    N, C_in, H, W = 2, 4, 16, 16
    x = jax.random.normal(kx, (N, C_in, H, W), jnp.float32)

    C_out = 8
    params = init_pooling_params(kp, C_in, C_out, affine=True)

    # Config 1: avg pooling with ReLU+1x1conv+BN preprocess, stride 2 (folded-count matmul).
    y1 = pooling_forward(x, params, stride=2, mode="avg")
    jax.block_until_ready(y1)
    r1 = ref_pooling(x, params, stride=2, mode="avg")
    assert y1.shape == (N, C_out, 8, 8), y1.shape
    assert jnp.allclose(y1, r1, atol=1e-4, rtol=1e-4), float(jnp.max(jnp.abs(y1 - r1)))

    # Config 2: max pooling, no preprocess, stride 1 (pure roll path, row-batched).
    y2 = pooling_forward(x, None, stride=1, mode="max")
    jax.block_until_ready(y2)
    r2 = ref_pooling(x, None, stride=1, mode="max")
    assert y2.shape == (N, C_in, H, W), y2.shape
    assert jnp.allclose(y2, r2, atol=1e-4, rtol=1e-4), float(jnp.max(jnp.abs(y2 - r2)))

    # Config 3: max pooling with preprocess, stride 2 (rolls + one-hot downsample matmul).
    y3 = pooling_forward(x, params, stride=2, mode="max")
    jax.block_until_ready(y3)
    r3 = ref_pooling(x, params, stride=2, mode="max")
    assert y3.shape == (N, C_out, 8, 8), y3.shape
    assert jnp.allclose(y3, r3, atol=1e-4, rtol=1e-4), float(jnp.max(jnp.abs(y3 - r3)))

    # Config 4: avg pooling, no preprocess, stride 1 (reciprocal-count vector path).
    y4 = pooling_forward(x, None, stride=1, mode="avg")
    jax.block_until_ready(y4)
    r4 = ref_pooling(x, None, stride=1, mode="avg")
    assert y4.shape == (N, C_in, H, W), y4.shape
    assert jnp.allclose(y4, r4, atol=1e-4, rtol=1e-4), float(jnp.max(jnp.abs(y4 - r4)))

    print("KERNEL_OK")
</pallas_src>

<mosaic_0001>
module attributes {stable_mosaic.version = 11 : i64} {
  func.func @_pooling_kernel(%arg0: i32, %arg1: memref<2x4x256xf32, #tpu.memory_space<vmem>>, %arg2: memref<8x4xf32, #tpu.memory_space<vmem>>, %arg3: memref<8x1xf32, #tpu.memory_space<vmem>>, %arg4: memref<4x256xf32, #tpu.memory_space<vmem>>, %arg5: memref<256x64xf32, #tpu.memory_space<vmem>>, %arg6: memref<16x64xf32, #tpu.memory_space<vmem>>) attributes {dimension_semantics = [#tpu.dimension_semantics<parallel>], iteration_bounds = array<i64: 1>, scalar_prefetch = 0 : i64, scratch_operands = 0 : i64, tpu.core_type = #tpu.core_type<tc>, window_params = [{transform_indices = @transform_0, window_bounds = array<i64: 2, 4, 256>}, {pipeline_mode = #tpu.pipeline_mode<synchronous>, transform_indices = @transform_1, window_bounds = array<i64: 8, 4>}, {pipeline_mode = #tpu.pipeline_mode<synchronous>, transform_indices = @transform_2, window_bounds = array<i64: 8, 1>}, {pipeline_mode = #tpu.pipeline_mode<synchronous>, transform_indices = @transform_3, window_bounds = array<i64: 4, 256>}, {pipeline_mode = #tpu.pipeline_mode<synchronous>, transform_indices = @transform_4, window_bounds = array<i64: 256, 64>}, {transform_indices = @transform_5, window_bounds = array<i64: 16, 64>}]} {
    %c0 = arith.constant 0 : index
    %c0_0 = arith.constant 0 : index
    %0 = vector.load %arg2[%c0, %c0_0] : memref<8x4xf32, #tpu.memory_space<vmem>>, vector<8x4xf32>
    %c0_1 = arith.constant 0 : index
    %c0_2 = arith.constant 0 : index
    %1 = vector.load %arg3[%c0_1, %c0_2] : memref<8x1xf32, #tpu.memory_space<vmem>>, vector<8x1xf32>
    %c0_3 = arith.constant 0 : index
    %c0_4 = arith.constant 0 : index
    %c0_5 = arith.constant 0 : index
    %2 = vector.load %arg1[%c0_3, %c0_4, %c0_5] : memref<2x4x256xf32, #tpu.memory_space<vmem>>, vector<1x4x256xf32>
    %3 = vector.shape_cast %2 : vector<1x4x256xf32> to vector<4x256xf32>
    %cst = arith.constant 0.000000e+00 : f32
    %4 = vector.broadcast %cst : f32 to vector<4x256xf32>
    %5 = arith.maximumf %3, %4 : vector<4x256xf32>
    %cst_6 = arith.constant dense<0.000000e+00> : vector<8x256xf32>
    %6 = tpu.matmul %0, %5, %cst_6 {dimension_numbers = #tpu.dot_dimension_numbers<[1], [0], [0], [1], [0, 0, 1, 1], [], []>} : vector<8x4xf32>, vector<4x256xf32>, vector<8x256xf32> -> vector<8x256xf32>
    %7 = vector.broadcast %1 : vector<8x1xf32> to vector<8x256xf32>
    %8 = arith.addf %6, %7 : vector<8x256xf32>
    %c1 = arith.constant 1 : index
    %c0_7 = arith.constant 0 : index
    %c0_8 = arith.constant 0 : index
    %9 = vector.load %arg1[%c1, %c0_7, %c0_8] : memref<2x4x256xf32, #tpu.memory_space<vmem>>, vector<1x4x256xf32>
    %10 = vector.shape_cast %9 : vector<1x4x256xf32> to vector<4x256xf32>
    %cst_9 = arith.constant 0.000000e+00 : f32
    %11 = vector.broadcast %cst_9 : f32 to vector<4x256xf32>
    %12 = arith.maximumf %10, %11 : vector<4x256xf32>
    %cst_10 = arith.constant dense<0.000000e+00> : vector<8x256xf32>
    %13 = tpu.matmul %0, %12, %cst_10 {dimension_numbers = #tpu.dot_dimension_numbers<[1], [0], [0], [1], [0, 0, 1, 1], [], []>} : vector<8x4xf32>, vector<4x256xf32>, vector<8x256xf32> -> vector<8x256xf32>
    %14 = vector.broadcast %1 : vector<8x1xf32> to vector<8x256xf32>
    %15 = arith.addf %13, %14 : vector<8x256xf32>
    %16 = tpu.concatenate %8, %15 in 0 : vector<8x256xf32>, vector<8x256xf32> -> vector<16x256xf32>
    %c0_11 = arith.constant 0 : index
    %c0_12 = arith.constant 0 : index
    %17 = vector.load %arg4[%c0_11, %c0_12] : memref<4x256xf32, #tpu.memory_space<vmem>>, vector<1x256xf32>
    %c1_13 = arith.constant 1 : index
    %c0_14 = arith.constant 0 : index
    %18 = vector.load %arg4[%c1_13, %c0_14] : memref<4x256xf32, #tpu.memory_space<vmem>>, vector<1x256xf32>
    %c2 = arith.constant 2 : index
    %c0_15 = arith.constant 0 : index
    %19 = vector.load %arg4[%c2, %c0_15] : memref<4x256xf32, #tpu.memory_space<vmem>>, vector<1x256xf32>
    %c3 = arith.constant 3 : index
    %c0_16 = arith.constant 0 : index
    %20 = vector.load %arg4[%c3, %c0_16] : memref<4x256xf32, #tpu.memory_space<vmem>>, vector<1x256xf32>
    %cst_17 = arith.constant 5.000000e-01 : f32
    %21 = vector.broadcast %cst_17 : f32 to vector<1x256xf32>
    %22 = arith.cmpf ogt, %17, %21 : vector<1x256xf32>
    %c1_i32 = arith.constant 1 : i32
    %23 = tpu.dynamic_rotate %16 by %c1_i32 dim 1 : vector<16x256xf32>, i32 -> vector<16x256xf32>
    %cst_18 = arith.constant 0.000000e+00 : f32
    %24 = vector.shape_cast %22 : vector<1x256xi1> to vector<1x256xi1>
    %25 = vector.broadcast %24 : vector<1x256xi1> to vector<16x256xi1>
    %26 = vector.broadcast %cst_18 : f32 to vector<16x256xf32>
    %27 = arith.select %25, %23, %26 : vector<16x256xi1>, vector<16x256xf32>
    %cst_19 = arith.constant 5.000000e-01 : f32
    %28 = vector.broadcast %cst_19 : f32 to vector<1x256xf32>
    %29 = arith.cmpf ogt, %18, %28 : vector<1x256xf32>
    %c255_i32 = arith.constant 255 : i32
    %30 = tpu.dynamic_rotate %16 by %c255_i32 dim 1 : vector<16x256xf32>, i32 -> vector<16x256xf32>
    %cst_20 = arith.constant 0.000000e+00 : f32
    %31 = vector.shape_cast %29 : vector<1x256xi1> to vector<1x256xi1>
    %32 = vector.broadcast %31 : vector<1x256xi1> to vector<16x256xi1>
    %33 = vector.broadcast %cst_20 : f32 to vector<16x256xf32>
    %34 = arith.select %32, %30, %33 : vector<16x256xi1>, vector<16x256xf32>
    %35 = arith.addf %16, %27 : vector<16x256xf32>
    %36 = arith.addf %35, %34 : vector<16x256xf32>
    %cst_21 = arith.constant 5.000000e-01 : f32
    %37 = vector.broadcast %cst_21 : f32 to vector<1x256xf32>
    %38 = arith.cmpf ogt, %19, %37 : vector<1x256xf32>
    %c16_i32 = arith.constant 16 : i32
    %39 = tpu.dynamic_rotate %36 by %c16_i32 dim 1 : vector<16x256xf32>, i32 -> vector<16x256xf32>
    %cst_22 = arith.constant 0.000000e+00 : f32
    %40 = vector.shape_cast %38 : vector<1x256xi1> to vector<1x256xi1>
    %41 = vector.broadcast %40 : vector<1x256xi1> to vector<16x256xi1>
    %42 = vector.broadcast %cst_22 : f32 to vector<16x256xf32>
    %43 = arith.select %41, %39, %42 : vector<16x256xi1>, vector<16x256xf32>
    %cst_23 = arith.constant 5.000000e-01 : f32
    %44 = vector.broadcast %cst_23 : f32 to vector<1x256xf32>
    %45 = arith.cmpf ogt, %20, %44 : vector<1x256xf32>
    %c240_i32 = arith.constant 240 : i32
    %46 = tpu.dynamic_rotate %36 by %c240_i32 dim 1 : vector<16x256xf32>, i32 -> vector<16x256xf32>
    %cst_24 = arith.constant 0.000000e+00 : f32
    %47 = vector.shape_cast %45 : vector<1x256xi1> to vector<1x256xi1>
    %48 = vector.broadcast %47 : vector<1x256xi1> to vector<16x256xi1>
    %49 = vector.broadcast %cst_24 : f32 to vector<16x256xf32>
    %50 = arith.select %48, %46, %49 : vector<16x256xi1>, vector<16x256xf32>
    %51 = arith.addf %36, %43 : vector<16x256xf32>
    %52 = arith.addf %51, %50 : vector<16x256xf32>
    %c0_25 = arith.constant 0 : index
    %c0_26 = arith.constant 0 : index
    %53 = vector.load %arg5[%c0_25, %c0_26] : memref<256x64xf32, #tpu.memory_space<vmem>>, vector<256x64xf32>
    %cst_27 = arith.constant dense<0.000000e+00> : vector<16x64xf32>
    %54 = tpu.matmul %52, %53, %cst_27 {dimension_numbers = #tpu.dot_dimension_numbers<[1], [0], [0], [1], [0, 0, 1, 1], [], []>} : vector<16x256xf32>, vector<256x64xf32>, vector<16x64xf32> -> vector<16x64xf32>
    %c0_28 = arith.constant 0 : index
    %c0_29 = arith.constant 0 : index
    %55 = vector.load %arg6[%c0_28, %c0_29] : memref<16x64xf32, #tpu.memory_space<vmem>>, vector<16x64xf32>
    tpu.vector_store %arg6[%c0_28, %c0_29], %54 {strides = array<i32>} : memref<16x64xf32, #tpu.memory_space<vmem>>, vector<16x64xf32>,
    return
  }
  func.func @transform_0(%arg0: i32) -> (i32, i32, i32) {
    %c0_i32 = arith.constant 0 : i32
    %c0_i32_0 = arith.constant 0 : i32
    %c0_i32_1 = arith.constant 0 : i32
    return %arg0, %c0_i32, %c0_i32_0 : i32, i32, i32
  }
  func.func @transform_1(%arg0: i32) -> (i32, i32) {
    %c0_i32 = arith.constant 0 : i32
    %c0_i32_0 = arith.constant 0 : i32
    %c0_i32_1 = arith.constant 0 : i32
    return %c0_i32, %c0_i32_0 : i32, i32
  }
  func.func @transform_2(%arg0: i32) -> (i32, i32) {
    %c0_i32 = arith.constant 0 : i32
    %c0_i32_0 = arith.constant 0 : i32
    %c0_i32_1 = arith.constant 0 : i32
    return %c0_i32, %c0_i32_0 : i32, i32
  }
  func.func @transform_3(%arg0: i32) -> (i32, i32) {
    %c0_i32 = arith.constant 0 : i32
    %c0_i32_0 = arith.constant 0 : i32
    %c0_i32_1 = arith.constant 0 : i32
    return %c0_i32, %c0_i32_0 : i32, i32
  }
  func.func @transform_4(%arg0: i32) -> (i32, i32) {
    %c0_i32 = arith.constant 0 : i32
    %c0_i32_0 = arith.constant 0 : i32
    %c0_i32_1 = arith.constant 0 : i32
    return %c0_i32, %c0_i32_0 : i32, i32
  }
  func.func @transform_5(%arg0: i32) -> (i32, i32) {
    %c0_i32 = arith.constant 0 : i32
    %c0_i32_0 = arith.constant 0 : i32
    return %arg0, %c0_i32 : i32, i32
  }
}

</mosaic_0001>

<bundles_post_ra>
// kernel: tpu_custom_call.1
= control target key start
LH: loop header
LB: loop body
LE: loop exit
PB: predicated region body
PF: predicated region fallthrough
CT: control target
= control target key end

     0   :  { %v589_v4 = vmov 0.0   ;;  %s883_s0 = inlined_call_operand.vmem [shape: f32[2,4,256], index: 0, kind: input, shape index: {}]   ;;  %s884_s1 = inlined_call_operand.vmem [shape: f32[8,4], index: 1, kind: input, shape index: {}]   ;;  %s885_s2 = inlined_call_operand.vmem [shape: f32[8,1], index: 2, kind: input, shape index: {}]   ;;  %s886_s3 = inlined_call_operand.vmem [shape: f32[4,256], index: 3, kind: input, shape index: {}]   ;;  %s887_s4 = inlined_call_operand.vmem [shape: f32[256,64], index: 4, kind: input, shape index: {}]   ;;  %s888_s5 = inlined_call_operand.hbm [shape: f32[16,64], index: 5, kind: output, shape index: {}]  }
   0x1   :  { %v23_v0 = vld [vmem:[%s883_s0] sm:$0xff]  ;;  %v462_v1 = vld [vmem:[%s883_s0 + $0x8] sm:$0xff]  ;;  %105 = vmatprep.mubr.f32.mxu0 %v589_v4  ;;  %185 = vmatprep.mubr.f32.mxu1 %v589_v4 }
   0x2   :  { %v24_v2 = vmax.f32 %v23_v0, 0.0  ;;  %v114_v3 = vmax.f32 %v462_v1, 0.0  ;;  %v22_v5 = vld [vmem:[%s885_s2] sm:$0xff] }
   0x3   :  { %10 = vsyncpa [#allocation3], 0  ;;  %vm36_vm0 = vcmask 1043456   ;;  %v590_v6 = vmov 0   ;;  %v21_v9 = vld [vmem:[%s884_s1] sm:$0xff]  ;;  %vm32_vm1 = vcmask 31744   ;;  %v208_v43 = vlaneseq }
   0x4   :  { %564 = vset.pattern.permute.xlu0 %v590_v6  ;;  %v31_v7 = vcombine.high %v24_v2, %v24_v2  ;;  %v116_v8 = vcombine.high %v114_v3, %v114_v3  ;;  %s591_s0 = smov 1   ;;  %s592_s1 = smov 127   ;;  %v349_v19 = vld [vmem:[%s887_s4 + $0x80] sm:$0xff]  ;;  %v350_v20 = vld [vmem:[%s887_s4 + $0x88] sm:$0xff]  ;;  %v351_v24 = vld [vmem:[%s887_s4 + $0x90] sm:$0xff] }
   0x5   :  { %27 = vperm.xlu0 %564, %v22_v5   ;;  %v333_v21 = vld [vmem:[%s887_s4] sm:$0xff]  ;;  %v507_v22 = vpack.c.bf16 %v350_v20, %v349_v19  ;;  %v334_v23 = vld [vmem:[%s887_s4 + $0x8] sm:$0xff]  ;;  %v352_v25 = vld [vmem:[%s887_s4 + $0x98] sm:$0xff]  ;;  %v217_v45 = vshrl.u32 %v208_v43, 7  ;;  %v714_v51 = vand.u32 127, %v208_v43  ;;  %s593_s12 = smov 16  }
   0x6   :  { %459 = vmatprep.subr.msk.mxu0 %vm36_vm0, %v31_v7  ;;  %463 = vmatprep.subr.msk.mxu1 %vm36_vm0, %v116_v8  ;;  %v509_v26 = vpack.c.bf16 %v334_v23, %v333_v21  ;;  %v511_v27 = vpack.c.bf16 %v352_v25, %v351_v24  ;;  %v335_v28 = vld [vmem:[%s887_s4 + $0x10] sm:$0xff]  ;;  %v336_v29 = vld [vmem:[%s887_s4 + $0x18] sm:$0xff]  ;;  %v353_v30 = vld [vmem:[%s887_s4 + $0xa0] sm:$0xff] }
   0x7   :  { %460 = vmatpush1.msk.msra.mxu0 %vm36_vm0, %v24_v2  ;;  %464 = vmatpush1.msk.msra.mxu1 %vm36_vm0, %v114_v3  ;;  %v354_v31 = vld [vmem:[%s887_s4 + $0xa8] sm:$0xff]  ;;  %v513_v32 = vpack.c.bf16 %v336_v29, %v335_v28  ;;  %v337_v34 = vld [vmem:[%s887_s4 + $0x20] sm:$0xff]  ;;  %v355_v36 = vld [vmem:[%s887_s4 + $0xb0] sm:$0xff]  ;;  %v711_v47 = vsub.s32 0, %v217_v45  ;;  %v716_v52 = vsub.s32 1, %v217_v45  ;;  %vm210_vm4 = vcmp.lt.s32.totalorder %v714_v51, 1 }
   0x8   :  { %461 = vmatmul.mubr.msk.f32.vlgmr.msra.gmra.mrb[0].mxu0 %vm32_vm1, %v21_v9  ;;  %465 = vmatmul.mubr.msk.f32.vlgmr.msra.gmra.mrb[0].mxu1 %vm32_vm1, %v21_v9  ;;  %v515_v33 = vpack.c.bf16 %v354_v31, %v353_v30  ;;  %v338_v35 = vld [vmem:[%s887_s4 + $0x28] sm:$0xff]  ;;  %v356_v37 = vld [vmem:[%s887_s4 + $0xb8] sm:$0xff]  ;;  %v339_v40 = vld [vmem:[%s887_s4 + $0x30] sm:$0xff]  ;;  %vm239_vm7 = vcmp.lt.s32.totalorder %v714_v51, 127  ;;  %vm276_vm12 = vcmp.lt.s32.totalorder %v714_v51, 16  ;;  %vm305_vm15 = vcmp.lt.s32.totalorder %v714_v51, 112 }
   0x9   :  { %508 = vmatprep.subr.bf16.mxu0 %v507_v22  ;;  %539 = vmatprep.subr.bf16.mxu1 %v507_v22  ;;  %v517_v38 = vpack.c.bf16 %v338_v35, %v337_v34  ;;  %v519_v39 = vpack.c.bf16 %v356_v37, %v355_v36  ;;  %v340_v41 = vld [vmem:[%s887_s4 + $0x38] sm:$0xff]  ;;  %v192_v44 = vld [vmem:[%s886_s3] ss:$4 sm:$0x3]  ;;  %v358_v54 = vld [vmem:[%s887_s4 + $0xc8] sm:$0xff] }
   0xa   :  { %510 = vmatpush3.bf16.msra.mxu0 %v509_v26  ;;  %547 = vmatpush3.bf16.msra.mxu1 %v509_v26  ;;  %v521_v42 = vpack.c.bf16 %v340_v41, %v339_v40  ;;  %vm199_vm2 = vcmp.gt.f32.partialorder %v192_v44, 0.5  ;;  %v466_v46 = vld [vmem:[%s886_s3 + $0x1] ss:$4 sm:$0x3]  ;;  %v342_v58 = vld [vmem:[%s887_s4 + $0x48] sm:$0xff]  ;;  %v359_v0 = vld [vmem:[%s887_s4 + $0xd0] sm:$0xff] }
   0xb   :  { %512 = vmatprep.subr.bf16.mxu0 %v511_v27  ;;  %540 = vmatprep.subr.bf16.mxu1 %v511_v27  ;;  %v215_v50 = vsel %vm199_vm2, 1, %v590_v6  ;;  %vm230_vm3 = vcmp.gt.f32.partialorder %v466_v46, 0.5  ;;  %v357_v53 = vld [vmem:[%s887_s4 + $0xc0] sm:$0xff]  ;;  %v360_v1 = vld [vmem:[%s887_s4 + $0xd8] sm:$0xff]  ;;  %v343_v7 = vld [vmem:[%s887_s4 + $0x50] sm:$0xff]  ;;  %vm440_vm2 = vcmask 523264  }
   0xc   :  { %v219_v55 = vrot.slane %v215_v50, %v711_v47  ;;  %v523_v56 = vpack.c.bf16 %v358_v54, %v357_v53  ;;  %v341_v57 = vld [vmem:[%s887_s4 + $0x40] sm:$0xff]  ;;  %v244_v61 = vsel %vm230_vm3, 1, %v590_v6  ;;  %v223_v63 = vrot.slane %v215_v50, %v716_v52  ;;  %v344_v8 = vld [vmem:[%s887_s4 + $0x58] sm:$0xff]  ;;  %v362_v22 = vld [vmem:[%s887_s4 + $0xe8] sm:$0xff] }
   0xd   :  { %v525_v62 = vpack.c.bf16 %v342_v58, %v341_v57  ;;  %v248_v3 = vrot.slane %v244_v61, %v711_v47  ;;  %v252_v4 = vrot.slane %v244_v61, %v716_v52  ;;  %v527_v5 = vpack.c.bf16 %v360_v1, %v359_v0  ;;  %v361_v21 = vld [vmem:[%s887_s4 + $0xe0] sm:$0xff]  ;;  %v346_v28 = vld [vmem:[%s887_s4 + $0x68] sm:$0xff]  ;;  %v363_v41 = vld [vmem:[%s887_s4 + $0xf0] sm:$0xff] }
   0xe   :  { %514 = vmatpush3.bf16.msra.mxu0 %v513_v32  ;;  %548 = vmatpush3.bf16.msra.mxu1 %v513_v32  ;;  %vm740_vm5 = vcmp.eq.s32.totalorder %v219_v55, 1  ;;  %vm756_vm6 = vcmp.eq.s32.totalorder %v223_v63, 1  ;;  %v345_v27 = vld [vmem:[%s887_s4 + $0x60] sm:$0xff]  ;;  %v347_v45 = vld [vmem:[%s887_s4 + $0x70] sm:$0xff]  ;;  %v348_v46 = vld [vmem:[%s887_s4 + $0x78] sm:$0xff] }
   0xf   :  { %516 = vmatprep.subr.bf16.mxu0 %v515_v33  ;;  %541 = vmatprep.subr.bf16.mxu1 %v515_v33  ;;  %vm775_vm8 = vcmp.eq.s32.totalorder %v248_v3, 1  ;;  %vm779_vm9 = vcmp.eq.s32.totalorder %v252_v4, 1  ;;  %v531_v33 = vpack.c.bf16 %v362_v22, %v361_v21  ;;  %v533_v34 = vpack.c.bf16 %v346_v28, %v345_v27  ;;  %v468_v58 = vld [vmem:[%s886_s3 + $0x3] ss:$4 sm:$0x3] }
  0x10   :  { %v537_v53 = vpack.c.bf16 %v348_v46, %v347_v45  ;;  %vm296_vm11 = vcmp.gt.f32.partialorder %v468_v58, 0.5 }
  0x11   :  { %v310_v1 = vsel %vm296_vm11, 1, %v590_v6 }
  0x12   :  { %518 = vmatpush3.bf16.msra.mxu0 %v517_v38  ;;  %549 = vmatpush3.bf16.msra.mxu1 %v517_v38 }
  0x13   :  { %520 = vmatprep.subr.bf16.mxu0 %v519_v39  ;;  %542 = vmatprep.subr.bf16.mxu1 %v519_v39 }
  0x16   :  { %522 = vmatpush3.bf16.msra.mxu0 %v521_v42  ;;  %550 = vmatpush3.bf16.msra.mxu1 %v521_v42  ;;  %v364_v42 = vld [vmem:[%s887_s4 + $0xf8] sm:$0xff]  ;;  %s594_s4 = smov 112  }
  0x17   :  { %524 = vmatprep.subr.bf16.mxu0 %v523_v56  ;;  %543 = vmatprep.subr.bf16.mxu1 %v523_v56  ;;  %v535_v50 = vpack.c.bf16 %v364_v42, %v363_v41 }
  0x1a   :  { %526 = vmatpush3.bf16.msra.mxu0 %v525_v62  ;;  %551 = vmatpush3.bf16.msra.mxu1 %v525_v62 }
  0x1b   :  { %528 = vmatprep.subr.bf16.mxu0 %v527_v5  ;;  %544 = vmatprep.subr.bf16.mxu1 %v527_v5 }
  0x84   :  { %v28_v10 = vpop.permute.xlu0 %27 }
  0xdb   :  { %v107_v11 = vpop.f32.mrb[0].mxu0  ;;  %v187_v12 = vpop.f32.mrb[0].mxu1 }
  0xdc   :  { %v641_v13 = vadd.f32 %v107_v11, %v28_v10  ;;  %v643_v14 = vadd.f32 %v187_v12, %v28_v10  ;;  %v109_v15 = vpop.f32.mrb[1].mxu0  ;;  %v189_v16 = vpop.f32.mrb[1].mxu1  ;;  %v529_v11 = vpack.c.bf16 %v344_v8, %v343_v7 }
  0xdd   :  { %v649_v17 = vadd.f32 %v109_v15, %v28_v10  ;;  %v651_v18 = vadd.f32 %v189_v16, %v28_v10 }
  0xde   :  { %202 = vrot.lane.b32.xlu1 %v643_v14, %s591_s0  ;;  %200 = vrot.lane.b32.xlu0 %v641_v13, %s591_s0 }
  0xdf   :  { %530 = vmatpush3.bf16.msra.mxu0 %v529_v11  ;;  %552 = vmatpush3.bf16.msra.mxu1 %v529_v11 }
  0xe0   :  { %532 = vmatprep.subr.bf16.mxu0 %v531_v33  ;;  %545 = vmatprep.subr.bf16.mxu1 %v531_v33 }
  0xe2   :  { %231 = vrot.lane.b32.xlu1 %v641_v13, %s592_s1  ;;  %233 = vrot.lane.b32.xlu0 %v643_v14, %s592_s1 }
  0xe3   :  { %534 = vmatpush3.bf16.msra.mxu0 %v533_v34  ;;  %553 = vmatpush3.bf16.msra.mxu1 %v533_v34 }
  0xe4   :  { %536 = vmatprep.subr.bf16.mxu0 %v535_v50  ;;  %546 = vmatprep.subr.bf16.mxu1 %v535_v50 }
  0xe6   :  { %204 = vrot.lane.b32.xlu1 %v649_v17, %s591_s0  ;;  %206 = vrot.lane.b32.xlu0 %v651_v18, %s591_s0 }
  0xe7   :  { %538 = vmatpush3.bf16.msra.mxu0 %v537_v53  ;;  %554 = vmatpush3.bf16.msra.mxu1 %v537_v53 }
  0xea   :  { %235 = vrot.lane.b32.xlu1 %v649_v17, %s592_s1  ;;  %237 = vrot.lane.b32.xlu0 %v651_v18, %s592_s1 }
 0x150   :  { %v203_v48 = vpop.permute.xlu1 %202  ;;  %v201_v49 = vpop.permute.xlu0 %200 }
 0x154   :  { %v232_v59 = vpop.permute.xlu1 %231  ;;  %v234_v60 = vpop.permute.xlu0 %233 }
 0x158   :  { %v205_v9 = vpop.permute.xlu1 %204  ;;  %v207_v10 = vpop.permute.xlu0 %206 }
 0x159   :  { %v213_v12 = vsel %vm210_vm4, %v205_v9, %v201_v49  ;;  %v214_v15 = vsel %vm210_vm4, %v207_v10, %v203_v48  ;;  %v211_v23 = vsel %vm210_vm4, %v201_v49, %v205_v9  ;;  %v212_v24 = vsel %vm210_vm4, %v203_v48, %v207_v10 }
 0x15a   :  { %v226_v19 = vsel %vm740_vm5, %v213_v12, 0.0  ;;  %v228_v20 = vsel %vm740_vm5, %v214_v15, 0.0  ;;  %v314_v9 = vrot.slane %v310_v1, %v711_v47  ;;  %v318_v10 = vrot.slane %v310_v1, %v716_v52 }
 0x15b   :  { %v259_v29 = vadd.f32 %v226_v19, %v641_v13  ;;  %v261_v30 = vadd.f32 %v228_v20, %v643_v14  ;;  %v227_v13 = vsel %vm756_vm6, %v211_v23, 0.0  ;;  %v229_v14 = vsel %vm756_vm6, %v212_v24, 0.0 }
 0x15c   :  { %v236_v31 = vpop.permute.xlu1 %235  ;;  %v238_v32 = vpop.permute.xlu0 %237  ;;  %v260_v54 = vadd.f32 %v227_v13, %v649_v17  ;;  %v262_v55 = vadd.f32 %v229_v14, %v651_v18  ;;  %v467_v17 = vld [vmem:[%s886_s3 + $0x2] ss:$4 sm:$0x3]  ;;  %vm855_vm0 = vcmp.eq.s32.totalorder %v314_v9, 1  ;;  %vm859_vm1 = vcmp.eq.s32.totalorder %v318_v10, 1  ;;  %s595_s3 = smov [#allocation2]  }
 0x15d   :  { %v240_v35 = vsel %vm239_vm7, %v232_v59, %v236_v31  ;;  %v242_v36 = vsel %vm239_vm7, %v236_v31, %v232_v59  ;;  %v241_v37 = vsel %vm239_vm7, %v234_v60, %v238_v32  ;;  %v243_v38 = vsel %vm239_vm7, %v238_v32, %v234_v60  ;;  %s448_s17 = sshll.u32 %s595_s3, 4  ;;  %s449_s17 = int_to_ptr.vmem [resolvable:$true] %s448_s17 }
 0x15e   :  { %v255_v39 = vsel %vm775_vm8, %v240_v35, 0.0  ;;  %v257_v40 = vsel %vm775_vm8, %v241_v37, 0.0  ;;  %v256_v48 = vsel %vm779_vm9, %v242_v36, 0.0  ;;  %v258_v49 = vsel %vm779_vm9, %v243_v38, 0.0  ;;  %s565_s18 = scalar_lea.vmem %s449_s17, 256  ;;  %p570_p1 = scmp.lt.s32.totalorder %s449_s17, %s449_s17 }
 0x15f   :  { %v263_v43 = vadd.f32 %v259_v29, %v255_v39  ;;  %v265_v44 = vadd.f32 %v261_v30, %v257_v40  ;;  %v264_v56 = vadd.f32 %v260_v54, %v256_v48  ;;  %v266_v57 = vadd.f32 %v262_v55, %v258_v49  ;;  %p566_p0 = scmp.ne.s32.totalorder %s449_s17, %s565_s18  ;;  %p571_p2 = scmp.lt.s32.totalorder %s565_s18, %s565_s18 }
 0x160   :  { %vm267_vm10 = vcmp.gt.f32.partialorder %v467_v17, 0.5 }
 0x161   :  { %268 = vrot.lane.b32.xlu1 %v263_v43, %s593_s12  ;;  %270 = vrot.lane.b32.xlu0 %v265_v44, %s593_s12  ;;  %v281_v18 = vsel %vm267_vm10, 1, %v590_v6  ;;  %p572_p3 = por %p571_p2, %p570_p1 }
 0x162   :  { %v285_v61 = vrot.slane %v281_v18, %v711_v47  ;;  %v289_v62 = vrot.slane %v281_v18, %v716_v52 }
 0x163   :  { %p573_p4 = pnand %p572_p3, %p566_p0 }
 0x164   :  { %vm836_vm13 = vcmp.eq.s32.totalorder %v285_v61, 1  ;;  %vm840_vm14 = vcmp.eq.s32.totalorder %v289_v62, 1 }
 0x165   :  { %272 = vrot.lane.b32.xlu1 %v264_v56, %s593_s12  ;;  %274 = vrot.lane.b32.xlu0 %v266_v57, %s593_s12 }
 0x169   :  { %297 = vrot.lane.b32.xlu1 %v263_v43, %s594_s4  ;;  %299 = vrot.lane.b32.xlu0 %v265_v44, %s594_s4 }
 0x16d   :  { %301 = vrot.lane.b32.xlu1 %v264_v56, %s594_s4  ;;  %303 = vrot.lane.b32.xlu0 %v266_v57, %s594_s4 }
 0x1d3   :  { %v269_v59 = vpop.permute.xlu1 %268  ;;  %v271_v60 = vpop.permute.xlu0 %270 }
 0x1d7   :  { %v273_v63 = vpop.permute.xlu1 %272  ;;  %v275_v0 = vpop.permute.xlu0 %274 }
 0x1d8   :  { %v277_v4 = vsel %vm276_vm12, %v269_v59, %v273_v63  ;;  %v279_v5 = vsel %vm276_vm12, %v273_v63, %v269_v59  ;;  %v278_v7 = vsel %vm276_vm12, %v271_v60, %v275_v0  ;;  %v280_v8 = vsel %vm276_vm12, %v275_v0, %v271_v60 }
 0x1d9   :  { %v292_v6 = vsel %vm836_vm13, %v279_v5, 0.0  ;;  %v293_v15 = vsel %vm840_vm14, %v277_v4, 0.0  ;;  %v294_v16 = vsel %vm836_vm13, %v280_v8, 0.0  ;;  %v295_v19 = vsel %vm840_vm14, %v278_v7, 0.0 }
 0x1da   :  { %v325_v20 = vadd.f32 %v292_v6, %v263_v43  ;;  %v326_v21 = vadd.f32 %v293_v15, %v264_v56  ;;  %v327_v22 = vadd.f32 %v294_v16, %v265_v44  ;;  %v328_v23 = vadd.f32 %v295_v19, %v266_v57 }
 0x1db   :  { %v298_v11 = vpop.permute.xlu1 %297  ;;  %v300_v12 = vpop.permute.xlu0 %299 }
 0x1df   :  { %v302_v24 = vpop.permute.xlu1 %301  ;;  %v304_v25 = vpop.permute.xlu0 %303 }
 0x1e0   :  { %v306_v26 = vsel %vm305_vm15, %v298_v11, %v302_v24  ;;  %v308_v27 = vsel %vm305_vm15, %v302_v24, %v298_v11  ;;  %v307_v28 = vsel %vm305_vm15, %v300_v12, %v304_v25  ;;  %v309_v29 = vsel %vm305_vm15, %v304_v25, %v300_v12 }
 0x1e1   :  { %v321_v51 = vsel %vm855_vm0, %v306_v26, 0.0  ;;  %v322_v30 = vsel %vm859_vm1, %v308_v27, 0.0  ;;  %v323_v31 = vsel %vm855_vm0, %v307_v28, 0.0  ;;  %v324_v32 = vsel %vm859_vm1, %v309_v29, 0.0 }
 0x1e2   :  { %v329_v33 = vadd.f32 %v325_v20, %v321_v51  ;;  %v330_v34 = vadd.f32 %v326_v21, %v322_v30  ;;  %v331_v35 = vadd.f32 %v327_v22, %v323_v31  ;;  %v332_v36 = vadd.f32 %v328_v23, %v324_v32 }
 0x1e4   :  { %429 = vmatprep.mubr.f32.mxu0 %v330_v34  ;;  %434 = vmatprep.mubr.f32.mxu1 %v332_v36 }
 0x1e5   :  { %430 = vmatmul.mubr.f32.vlgmr.msra.gmra.mrb[2].mxu0 %v329_v33  ;;  %435 = vmatmul.mubr.f32.vlgmr.msra.gmra.mrb[2].mxu1 %v331_v35 }
 0x2b8   :  { %v501_v37 = vpop.f32.mrb[2].mxu0  ;;  %v504_v38 = vpop.f32.mrb[2].mxu1 }
 0x2b9   :  { %v502_v13 = vpop.f32.mrb[3].mxu0  ;;  %v505_v14 = vpop.f32.mrb[3].mxu1 }
 0x2ba   :  { %v503_v39 = vadd.f32 %v502_v13, %v501_v37  ;;  %v506_v40 = vadd.f32 %v505_v14, %v504_v38 }
 0x2bc   :  { %441 = vst.msk [vmem:[#allocation2] sm:$0xff] %vm440_vm2, %v503_v39  ;;  %442 = vst.msk [vmem:[#allocation2 + $0x8] sm:$0xff] %vm440_vm2, %v506_v40 }
 0x2bd   :  { %576 = shalt.err (!%p573_p4)
}
 0x2be   :  { %s577_s21 = scalar_lea.hbm %s888_s5, 256 }
 0x2bf   :  { %p578_p5 = scmp.ne.s32.totalorder %s888_s5, %s577_s21  ;;  %p581_p6 = scmp.lt.u32.totalorder %s577_s21, %s888_s5 }
 0x2c1   :  { %p583_p7 = pnand %p581_p6, %p578_p5 }
 0x2c3   :  { %586 = shalt.err (!%p583_p7)
}
 0x2c4   :  { %s596_s0 = smov 128   ;;  %s597_s1 = smov 8  }
 0x2c5   :  { %454 = dma.vmem_to_hbm [thread:$0]  %s449_s17, 256, %s888_s5, [#allocation3], %s596_s0, %s596_s0, %s597_s1  }
 0x2c6   :  { %587 = dma.done.wait [#allocation3], 256  }
 0x2c7   :  { %588 = vsyncadd [#allocation3], 4294967040 }
 0x2c8   :  { %458 = vsyncpa [#allocation3], 1 }

</bundles_post_ra>
